<compile_context>
chip_gen: v6e
topology: v6e:2x2x1
jax: 0.10.0
libtpu: 0.0.40
codegen_flags: <defaults>
</compile_context>

<pallas_src>
import functools

import jax
import jax.numpy as jnp
import numpy as np
from jax.experimental import pallas as pl
from jax.experimental.pallas import tpu as pltpu

_SMOOTH = 1e-5
_LANE = 128
_SUBLANE = 8


def _cdiv(a, b):
    return -(-a // b)


def _round_up(x, m):
    return _cdiv(x, m) * m


def _choose_tile_rows(n_rows, c, itemsize, requested):
    """Rows (of 128 pixels) per streamed tile: multiple of 8, big enough to
    amortize per-step overhead, small enough that double-buffered inputs plus
    the in-kernel f32 temporaries stay far under the scoped-VMEM limit."""
    # Bytes per row: 2x-buffered score + 2x-buffered int32 labels + ~4 live
    # f32 (rows,128) temporaries inside the per-class loop.
    bytes_per_row = 2 * (c * _LANE * itemsize + _LANE * 4) + 4 * _LANE * 4
    budget = 12 * 1024 * 1024
    cap = max(_SUBLANE, budget // max(1, bytes_per_row))

    if requested is None:
        target_block_bytes = 2 * 1024 * 1024          # ~2 MiB score block / step
        rows = target_block_bytes // max(1, c * _LANE * itemsize)
    else:
        rows = int(requested)

    rows = min(rows, cap, _round_up(n_rows, _SUBLANE))
    rows = max(_SUBLANE, (rows // _SUBLANE) * _SUBLANE)
    return int(rows)


def _dice_kernel(score_ref, labels_ref, out_ref, *, n_classes):
    """score_ref: (C, tr, 128) float; labels_ref: (tr, 128) int32;
    out_ref: (3*C, 8, 128) f32 — [intersect | sum(score^2) | sum(onehot)]
    sublane/lane-partial sums, resident across the pixel-tile grid axis."""
    j = pl.program_id(1)

    @pl.when(j == 0)
    def _init():
        out_ref[...] = jnp.zeros_like(out_ref)

    lab = labels_ref[...]                                   # (tr, 128) int32
    tr = lab.shape[0]
    groups = tr // _SUBLANE                                 # tr is a multiple of 8

    def fold(x):                                            # (tr,128) -> (8,128)
        # Vreg-boundary reshape: sum over the leading axis = pure VPU adds.
        return jnp.sum(x.reshape(groups, _SUBLANE, _LANE), axis=0)

    for c in range(n_classes):
        s = score_ref[c].astype(jnp.float32)                # (tr, 128)
        oh = (lab == c).astype(jnp.float32)                 # (tr, 128)
        out_ref[c] += fold(s * oh)                          # intersect
        out_ref[n_classes + c] += fold(s * s)               # z_sum
        out_ref[2 * n_classes + c] += fold(oh)              # y_sum (onehot is 0/1)


@functools.partial(jax.jit, static_argnames=("n_classes", "softmax", "tile_rows"))
def dice_loss(inputs, target, *, n_classes, weight=None, softmax=False,
              tile_rows=None):
    """inputs: (N, C, H, W) float; target: (N, H, W) integer labels. Scalar loss."""
    N, C, H, W = inputs.shape
    assert C == n_classes, (inputs.shape, n_classes)
    HW = H * W

    score = inputs
    if softmax:
        # Kept as glue (module default is softmax=False); fusing it in-kernel
        # would make padded pixels contribute 1/C to z_sum.
        score = jax.nn.softmax(score.astype(jnp.float32), axis=1)
    if score.dtype not in (jnp.float32, jnp.bfloat16, jnp.float16):
        score = score.astype(jnp.float32)
    itemsize = jnp.dtype(score.dtype).itemsize

    n_rows = _cdiv(HW, _LANE)
    tr = _choose_tile_rows(n_rows, C, itemsize, tile_rows)
    num_tiles = _cdiv(n_rows, tr)
    rows_pad = num_tiles * tr
    hw_pad = rows_pad * _LANE

    # Repack pixels onto (rows, 128). Padded pixels use score=0 and
    # label=n_classes: exactly zero contribution to all three sums, so the
    # kernel needs no validity mask.
    score = score.reshape(N, C, HW)
    labels = target.reshape(N, HW).astype(jnp.int32)
    if hw_pad != HW:
        pad = hw_pad - HW
        score = jnp.pad(score, ((0, 0), (0, 0), (0, pad)))
        labels = jnp.pad(labels, ((0, 0), (0, pad)), constant_values=n_classes)
    score = score.reshape(N, C, rows_pad, _LANE)
    labels = labels.reshape(N, rows_pad, _LANE)

    kernel = functools.partial(_dice_kernel, n_classes=C)

    out = pl.pallas_call(
        kernel,
        out_shape=jax.ShapeDtypeStruct((N, 3 * C, _SUBLANE, _LANE), jnp.float32),
        grid_spec=pltpu.PrefetchScalarGridSpec(
            num_scalar_prefetch=0,
            grid=(N, num_tiles),
            in_specs=[
                pl.BlockSpec((None, C, tr, _LANE), lambda n, j: (n, 0, j, 0)),
                pl.BlockSpec((None, tr, _LANE), lambda n, j: (n, j, 0)),
            ],
            out_specs=pl.BlockSpec((None, 3 * C, _SUBLANE, _LANE),
                                   lambda n, j: (n, 0, 0, 0)),
        ),
        compiler_params=pltpu.CompilerParams(
            dimension_semantics=("parallel", "arbitrary"),
            vmem_limit_bytes=32 * 1024 * 1024,
        ),
    )(score, labels)

    # Tiny glue: reduce the (N, 3, C, 8*128) partials, then dice + weighted mean.
    sums = out.reshape(N, 3, C, _SUBLANE * _LANE).sum(axis=(0, 3))   # (3, C)
    inter, z_sum, y_sum = sums[0], sums[1], sums[2]
    dice = 1.0 - (2.0 * inter + _SMOOTH) / (z_sum + y_sum + _SMOOTH)

    if weight is None:
        w = jnp.ones((C,), jnp.float32)
    else:
        w = jnp.asarray(weight, jnp.float32)
    return jnp.sum(dice * w) / n_classes


def _dice_loss_ref(inputs, target, n_classes):
    """Pure-JAX reference mirroring the PyTorch module (softmax=False, weight=None)."""
    tgt = jax.nn.one_hot(target, n_classes, axis=1, dtype=jnp.float32)  # (N, C, H, W)
    loss = 0.0
    for i in range(n_classes):
        s = inputs[:, i].astype(jnp.float32)
        t = tgt[:, i]
        inter = jnp.sum(s * t)
        y = jnp.sum(t * t)
        z = jnp.sum(s * s)
        d = 1.0 - (2.0 * inter + _SMOOTH) / (z + y + _SMOOTH)
        loss = loss + d
    return loss / n_classes


if __name__ == "__main__":
    key = jax.random.PRNGKey(0)
    k1, k2, k3, k4 = jax.random.split(key, 4)

    # Main case: batch=2, classes=4, spatial 16x16 (module default softmax=False:
    # caller passes probability-like scores).
    N, C, H, W = 2, 4, 16, 16
    inputs = jax.random.uniform(k1, (N, C, H, W), dtype=jnp.float32)
    target = jax.random.randint(k2, (N, H, W), 0, C, dtype=jnp.int32)

    loss = jax.block_until_ready(dice_loss(inputs, target, n_classes=C))
    ref = jax.block_until_ready(_dice_loss_ref(inputs, target, C))
    np.testing.assert_allclose(np.asarray(loss), np.asarray(ref), rtol=1e-4, atol=1e-5)

    # Odd spatial size (HW not a multiple of 128) exercises the padding path.
    H2, W2 = 10, 13
    inputs2 = jax.random.uniform(k3, (N, C, H2, W2), dtype=jnp.float32)
    target2 = jax.random.randint(k4, (N, H2, W2), 0, C, dtype=jnp.int32)
    loss2 = jax.block_until_ready(dice_loss(inputs2, target2, n_classes=C))
    ref2 = jax.block_until_ready(_dice_loss_ref(inputs2, target2, C))
    np.testing.assert_allclose(np.asarray(loss2), np.asarray(ref2), rtol=1e-4, atol=1e-5)

    print("KERNEL_OK")
</pallas_src>

<mosaic_0001>
module attributes {stable_mosaic.version = 11 : i64} {
  func.func @_dice_kernel(%arg0: i32, %arg1: i32, %arg2: memref<1x4x8x128xf32, #tpu.memory_space<vmem>>, %arg3: memref<1x8x128xi32, #tpu.memory_space<vmem>>, %arg4: memref<1x12x8x128xf32, #tpu.memory_space<vmem>>) attributes {dimension_semantics = [#tpu.dimension_semantics<parallel>, #tpu.dimension_semantics<arbitrary>], iteration_bounds = array<i64: 2, 1>, scalar_prefetch = 0 : i64, scratch_operands = 0 : i64, tpu.core_type = #tpu.core_type<tc>, window_params = [{transform_indices = @transform_0, window_bounds = array<i64: 1, 4, 8, 128>}, {transform_indices = @transform_1, window_bounds = array<i64: 1, 8, 128>}, {transform_indices = @transform_2, window_bounds = array<i64: 1, 12, 8, 128>}]} {
    %c0_i32 = arith.constant 0 : i32
    %0 = arith.cmpi eq, %arg1, %c0_i32 : i32
    %1 = arith.extui %0 : i1 to i32
    %c0_i32_0 = arith.constant 0 : i32
    %2 = arith.cmpi ne, %1, %c0_i32_0 : i32
    scf.if %2 {
      %cst_116 = arith.constant 0.000000e+00 : f32
      %133 = vector.broadcast %cst_116 : f32 to vector<12x8x128xf32>
      %c0_117 = arith.constant 0 : index
      %c0_118 = arith.constant 0 : index
      %c0_119 = arith.constant 0 : index
      %c0_120 = arith.constant 0 : index
      %134 = vector.load %arg4[%c0_117, %c0_118, %c0_119, %c0_120] : memref<1x12x8x128xf32, #tpu.memory_space<vmem>>, vector<1x12x8x128xf32>
      %135 = vector.shape_cast %134 : vector<1x12x8x128xf32> to vector<12x8x128xf32>
      %136 = vector.shape_cast %133 : vector<12x8x128xf32> to vector<1x12x8x128xf32>
      tpu.vector_store %arg4[%c0_117, %c0_118, %c0_119, %c0_120], %136 {strides = array<i32>} : memref<1x12x8x128xf32, #tpu.memory_space<vmem>>, vector<1x12x8x128xf32>,
    } else {
    }
    %c0 = arith.constant 0 : index
    %c0_1 = arith.constant 0 : index
    %c0_2 = arith.constant 0 : index
    %3 = vector.load %arg3[%c0, %c0_1, %c0_2] : memref<1x8x128xi32, #tpu.memory_space<vmem>>, vector<1x8x128xi32>
    %4 = vector.shape_cast %3 : vector<1x8x128xi32> to vector<8x128xi32>
    %c0_3 = arith.constant 0 : index
    %c0_4 = arith.constant 0 : index
    %c0_5 = arith.constant 0 : index
    %c0_6 = arith.constant 0 : index
    %5 = vector.load %arg2[%c0_3, %c0_4, %c0_5, %c0_6] : memref<1x4x8x128xf32, #tpu.memory_space<vmem>>, vector<1x1x8x128xf32>
    %6 = vector.shape_cast %5 : vector<1x1x8x128xf32> to vector<8x128xf32>
    %c0_i32_7 = arith.constant 0 : i32
    %7 = vector.broadcast %c0_i32_7 : i32 to vector<8x128xi32>
    %8 = arith.cmpi eq, %4, %7 : vector<8x128xi32>
    %9 = arith.extui %8 : vector<8x128xi1> to vector<8x128xi32>
    %10 = arith.sitofp %9 : vector<8x128xi32> to vector<8x128xf32>
    %c0_8 = arith.constant 0 : index
    %c0_9 = arith.constant 0 : index
    %c0_10 = arith.constant 0 : index
    %c0_11 = arith.constant 0 : index
    %11 = vector.load %arg4[%c0_8, %c0_9, %c0_10, %c0_11] : memref<1x12x8x128xf32, #tpu.memory_space<vmem>>, vector<1x1x8x128xf32>
    %12 = vector.shape_cast %11 : vector<1x1x8x128xf32> to vector<8x128xf32>
    %13 = arith.mulf %6, %10 : vector<8x128xf32>
    %14 = vector.shape_cast %13 : vector<8x128xf32> to vector<1x8x128xf32>
    %cst = arith.constant dense<0.000000e+00> : vector<8x128xf32>
    %15 = vector.multi_reduction <add>, %14, %cst [0] : vector<1x8x128xf32> to vector<8x128xf32>
    %16 = arith.addf %12, %15 : vector<8x128xf32>
    %c0_12 = arith.constant 0 : index
    %c0_13 = arith.constant 0 : index
    %c0_14 = arith.constant 0 : index
    %c0_15 = arith.constant 0 : index
    %17 = vector.load %arg4[%c0_12, %c0_13, %c0_14, %c0_15] : memref<1x12x8x128xf32, #tpu.memory_space<vmem>>, vector<1x1x8x128xf32>
    %18 = vector.shape_cast %17 : vector<1x1x8x128xf32> to vector<8x128xf32>
    %19 = vector.shape_cast %16 : vector<8x128xf32> to vector<1x1x8x128xf32>
    tpu.vector_store %arg4[%c0_12, %c0_13, %c0_14, %c0_15], %19 {strides = array<i32>} : memref<1x12x8x128xf32, #tpu.memory_space<vmem>>, vector<1x1x8x128xf32>,
    %c0_16 = arith.constant 0 : index
    %c4 = arith.constant 4 : index
    %c0_17 = arith.constant 0 : index
    %c0_18 = arith.constant 0 : index
    %20 = vector.load %arg4[%c0_16, %c4, %c0_17, %c0_18] : memref<1x12x8x128xf32, #tpu.memory_space<vmem>>, vector<1x1x8x128xf32>
    %21 = vector.shape_cast %20 : vector<1x1x8x128xf32> to vector<8x128xf32>
    %22 = arith.mulf %6, %6 : vector<8x128xf32>
    %23 = vector.shape_cast %22 : vector<8x128xf32> to vector<1x8x128xf32>
    %cst_19 = arith.constant dense<0.000000e+00> : vector<8x128xf32>
    %24 = vector.multi_reduction <add>, %23, %cst_19 [0] : vector<1x8x128xf32> to vector<8x128xf32>
    %25 = arith.addf %21, %24 : vector<8x128xf32>
    %c0_20 = arith.constant 0 : index
    %c4_21 = arith.constant 4 : index
    %c0_22 = arith.constant 0 : index
    %c0_23 = arith.constant 0 : index
    %26 = vector.load %arg4[%c0_20, %c4_21, %c0_22, %c0_23] : memref<1x12x8x128xf32, #tpu.memory_space<vmem>>, vector<1x1x8x128xf32>
    %27 = vector.shape_cast %26 : vector<1x1x8x128xf32> to vector<8x128xf32>
    %28 = vector.shape_cast %25 : vector<8x128xf32> to vector<1x1x8x128xf32>
    tpu.vector_store %arg4[%c0_20, %c4_21, %c0_22, %c0_23], %28 {strides = array<i32>} : memref<1x12x8x128xf32, #tpu.memory_space<vmem>>, vector<1x1x8x128xf32>,
    %c0_24 = arith.constant 0 : index
    %c8 = arith.constant 8 : index
    %c0_25 = arith.constant 0 : index
    %c0_26 = arith.constant 0 : index
    %29 = vector.load %arg4[%c0_24, %c8, %c0_25, %c0_26] : memref<1x12x8x128xf32, #tpu.memory_space<vmem>>, vector<1x1x8x128xf32>
    %30 = vector.shape_cast %29 : vector<1x1x8x128xf32> to vector<8x128xf32>
    %31 = vector.shape_cast %10 : vector<8x128xf32> to vector<1x8x128xf32>
    %cst_27 = arith.constant dense<0.000000e+00> : vector<8x128xf32>
    %32 = vector.multi_reduction <add>, %31, %cst_27 [0] : vector<1x8x128xf32> to vector<8x128xf32>
    %33 = arith.addf %30, %32 : vector<8x128xf32>
    %c0_28 = arith.constant 0 : index
    %c8_29 = arith.constant 8 : index
    %c0_30 = arith.constant 0 : index
    %c0_31 = arith.constant 0 : index
    %34 = vector.load %arg4[%c0_28, %c8_29, %c0_30, %c0_31] : memref<1x12x8x128xf32, #tpu.memory_space<vmem>>, vector<1x1x8x128xf32>
    %35 = vector.shape_cast %34 : vector<1x1x8x128xf32> to vector<8x128xf32>
    %36 = vector.shape_cast %33 : vector<8x128xf32> to vector<1x1x8x128xf32>
    tpu.vector_store %arg4[%c0_28, %c8_29, %c0_30, %c0_31], %36 {strides = array<i32>} : memref<1x12x8x128xf32, #tpu.memory_space<vmem>>, vector<1x1x8x128xf32>,
    %c0_32 = arith.constant 0 : index
    %c1 = arith.constant 1 : index
    %c0_33 = arith.constant 0 : index
    %c0_34 = arith.constant 0 : index
    %37 = vector.load %arg2[%c0_32, %c1, %c0_33, %c0_34] : memref<1x4x8x128xf32, #tpu.memory_space<vmem>>, vector<1x1x8x128xf32>
    %38 = vector.shape_cast %37 : vector<1x1x8x128xf32> to vector<8x128xf32>
    %c1_i32 = arith.constant 1 : i32
    %39 = vector.broadcast %c1_i32 : i32 to vector<8x128xi32>
    %40 = arith.cmpi eq, %4, %39 : vector<8x128xi32>
    %41 = arith.extui %40 : vector<8x128xi1> to vector<8x128xi32>
    %42 = arith.sitofp %41 : vector<8x128xi32> to vector<8x128xf32>
    %c0_35 = arith.constant 0 : index
    %c1_36 = arith.constant 1 : index
    %c0_37 = arith.constant 0 : index
    %c0_38 = arith.constant 0 : index
    %43 = vector.load %arg4[%c0_35, %c1_36, %c0_37, %c0_38] : memref<1x12x8x128xf32, #tpu.memory_space<vmem>>, vector<1x1x8x128xf32>
    %44 = vector.shape_cast %43 : vector<1x1x8x128xf32> to vector<8x128xf32>
    %45 = arith.mulf %38, %42 : vector<8x128xf32>
    %46 = vector.shape_cast %45 : vector<8x128xf32> to vector<1x8x128xf32>
    %cst_39 = arith.constant dense<0.000000e+00> : vector<8x128xf32>
    %47 = vector.multi_reduction <add>, %46, %cst_39 [0] : vector<1x8x128xf32> to vector<8x128xf32>
    %48 = arith.addf %44, %47 : vector<8x128xf32>
    %c0_40 = arith.constant 0 : index
    %c1_41 = arith.constant 1 : index
    %c0_42 = arith.constant 0 : index
    %c0_43 = arith.constant 0 : index
    %49 = vector.load %arg4[%c0_40, %c1_41, %c0_42, %c0_43] : memref<1x12x8x128xf32, #tpu.memory_space<vmem>>, vector<1x1x8x128xf32>
    %50 = vector.shape_cast %49 : vector<1x1x8x128xf32> to vector<8x128xf32>
    %51 = vector.shape_cast %48 : vector<8x128xf32> to vector<1x1x8x128xf32>
    tpu.vector_store %arg4[%c0_40, %c1_41, %c0_42, %c0_43], %51 {strides = array<i32>} : memref<1x12x8x128xf32, #tpu.memory_space<vmem>>, vector<1x1x8x128xf32>,
    %c0_44 = arith.constant 0 : index
    %c5 = arith.constant 5 : index
    %c0_45 = arith.constant 0 : index
    %c0_46 = arith.constant 0 : index
    %52 = vector.load %arg4[%c0_44, %c5, %c0_45, %c0_46] : memref<1x12x8x128xf32, #tpu.memory_space<vmem>>, vector<1x1x8x128xf32>
    %53 = vector.shape_cast %52 : vector<1x1x8x128xf32> to vector<8x128xf32>
    %54 = arith.mulf %38, %38 : vector<8x128xf32>
    %55 = vector.shape_cast %54 : vector<8x128xf32> to vector<1x8x128xf32>
    %cst_47 = arith.constant dense<0.000000e+00> : vector<8x128xf32>
    %56 = vector.multi_reduction <add>, %55, %cst_47 [0] : vector<1x8x128xf32> to vector<8x128xf32>
    %57 = arith.addf %53, %56 : vector<8x128xf32>
    %c0_48 = arith.constant 0 : index
    %c5_49 = arith.constant 5 : index
    %c0_50 = arith.constant 0 : index
    %c0_51 = arith.constant 0 : index
    %58 = vector.load %arg4[%c0_48, %c5_49, %c0_50, %c0_51] : memref<1x12x8x128xf32, #tpu.memory_space<vmem>>, vector<1x1x8x128xf32>
    %59 = vector.shape_cast %58 : vector<1x1x8x128xf32> to vector<8x128xf32>
    %60 = vector.shape_cast %57 : vector<8x128xf32> to vector<1x1x8x128xf32>
    tpu.vector_store %arg4[%c0_48, %c5_49, %c0_50, %c0_51], %60 {strides = array<i32>} : memref<1x12x8x128xf32, #tpu.memory_space<vmem>>, vector<1x1x8x128xf32>,
    %c0_52 = arith.constant 0 : index
    %c9 = arith.constant 9 : index
    %c0_53 = arith.constant 0 : index
    %c0_54 = arith.constant 0 : index
    %61 = vector.load %arg4[%c0_52, %c9, %c0_53, %c0_54] : memref<1x12x8x128xf32, #tpu.memory_space<vmem>>, vector<1x1x8x128xf32>
    %62 = vector.shape_cast %61 : vector<1x1x8x128xf32> to vector<8x128xf32>
    %63 = vector.shape_cast %42 : vector<8x128xf32> to vector<1x8x128xf32>
    %cst_55 = arith.constant dense<0.000000e+00> : vector<8x128xf32>
    %64 = vector.multi_reduction <add>, %63, %cst_55 [0] : vector<1x8x128xf32> to vector<8x128xf32>
    %65 = arith.addf %62, %64 : vector<8x128xf32>
    %c0_56 = arith.constant 0 : index
    %c9_57 = arith.constant 9 : index
    %c0_58 = arith.constant 0 : index
    %c0_59 = arith.constant 0 : index
    %66 = vector.load %arg4[%c0_56, %c9_57, %c0_58, %c0_59] : memref<1x12x8x128xf32, #tpu.memory_space<vmem>>, vector<1x1x8x128xf32>
    %67 = vector.shape_cast %66 : vector<1x1x8x128xf32> to vector<8x128xf32>
    %68 = vector.shape_cast %65 : vector<8x128xf32> to vector<1x1x8x128xf32>
    tpu.vector_store %arg4[%c0_56, %c9_57, %c0_58, %c0_59], %68 {strides = array<i32>} : memref<1x12x8x128xf32, #tpu.memory_space<vmem>>, vector<1x1x8x128xf32>,
    %c0_60 = arith.constant 0 : index
    %c2 = arith.constant 2 : index
    %c0_61 = arith.constant 0 : index
    %c0_62 = arith.constant 0 : index
    %69 = vector.load %arg2[%c0_60, %c2, %c0_61, %c0_62] : memref<1x4x8x128xf32, #tpu.memory_space<vmem>>, vector<1x1x8x128xf32>
    %70 = vector.shape_cast %69 : vector<1x1x8x128xf32> to vector<8x128xf32>
    %c2_i32 = arith.constant 2 : i32
    %71 = vector.broadcast %c2_i32 : i32 to vector<8x128xi32>
    %72 = arith.cmpi eq, %4, %71 : vector<8x128xi32>
    %73 = arith.extui %72 : vector<8x128xi1> to vector<8x128xi32>
    %74 = arith.sitofp %73 : vector<8x128xi32> to vector<8x128xf32>
    %c0_63 = arith.constant 0 : index
    %c2_64 = arith.constant 2 : index
    %c0_65 = arith.constant 0 : index
    %c0_66 = arith.constant 0 : index
    %75 = vector.load %arg4[%c0_63, %c2_64, %c0_65, %c0_66] : memref<1x12x8x128xf32, #tpu.memory_space<vmem>>, vector<1x1x8x128xf32>
    %76 = vector.shape_cast %75 : vector<1x1x8x128xf32> to vector<8x128xf32>
    %77 = arith.mulf %70, %74 : vector<8x128xf32>
    %78 = vector.shape_cast %77 : vector<8x128xf32> to vector<1x8x128xf32>
    %cst_67 = arith.constant dense<0.000000e+00> : vector<8x128xf32>
    %79 = vector.multi_reduction <add>, %78, %cst_67 [0] : vector<1x8x128xf32> to vector<8x128xf32>
    %80 = arith.addf %76, %79 : vector<8x128xf32>
    %c0_68 = arith.constant 0 : index
    %c2_69 = arith.constant 2 : index
    %c0_70 = arith.constant 0 : index
    %c0_71 = arith.constant 0 : index
    %81 = vector.load %arg4[%c0_68, %c2_69, %c0_70, %c0_71] : memref<1x12x8x128xf32, #tpu.memory_space<vmem>>, vector<1x1x8x128xf32>
    %82 = vector.shape_cast %81 : vector<1x1x8x128xf32> to vector<8x128xf32>
    %83 = vector.shape_cast %80 : vector<8x128xf32> to vector<1x1x8x128xf32>
    tpu.vector_store %arg4[%c0_68, %c2_69, %c0_70, %c0_71], %83 {strides = array<i32>} : memref<1x12x8x128xf32, #tpu.memory_space<vmem>>, vector<1x1x8x128xf32>,
    %c0_72 = arith.constant 0 : index
    %c6 = arith.constant 6 : index
    %c0_73 = arith.constant 0 : index
    %c0_74 = arith.constant 0 : index
    %84 = vector.load %arg4[%c0_72, %c6, %c0_73, %c0_74] : memref<1x12x8x128xf32, #tpu.memory_space<vmem>>, vector<1x1x8x128xf32>
    %85 = vector.shape_cast %84 : vector<1x1x8x128xf32> to vector<8x128xf32>
    %86 = arith.mulf %70, %70 : vector<8x128xf32>
    %87 = vector.shape_cast %86 : vector<8x128xf32> to vector<1x8x128xf32>
    %cst_75 = arith.constant dense<0.000000e+00> : vector<8x128xf32>
    %88 = vector.multi_reduction <add>, %87, %cst_75 [0] : vector<1x8x128xf32> to vector<8x128xf32>
    %89 = arith.addf %85, %88 : vector<8x128xf32>
    %c0_76 = arith.constant 0 : index
    %c6_77 = arith.constant 6 : index
    %c0_78 = arith.constant 0 : index
    %c0_79 = arith.constant 0 : index
    %90 = vector.load %arg4[%c0_76, %c6_77, %c0_78, %c0_79] : memref<1x12x8x128xf32, #tpu.memory_space<vmem>>, vector<1x1x8x128xf32>
    %91 = vector.shape_cast %90 : vector<1x1x8x128xf32> to vector<8x128xf32>
    %92 = vector.shape_cast %89 : vector<8x128xf32> to vector<1x1x8x128xf32>
    tpu.vector_store %arg4[%c0_76, %c6_77, %c0_78, %c0_79], %92 {strides = array<i32>} : memref<1x12x8x128xf32, #tpu.memory_space<vmem>>, vector<1x1x8x128xf32>,
    %c0_80 = arith.constant 0 : index
    %c10 = arith.constant 10 : index
    %c0_81 = arith.constant 0 : index
    %c0_82 = arith.constant 0 : index
    %93 = vector.load %arg4[%c0_80, %c10, %c0_81, %c0_82] : memref<1x12x8x128xf32, #tpu.memory_space<vmem>>, vector<1x1x8x128xf32>
    %94 = vector.shape_cast %93 : vector<1x1x8x128xf32> to vector<8x128xf32>
    %95 = vector.shape_cast %74 : vector<8x128xf32> to vector<1x8x128xf32>
    %cst_83 = arith.constant dense<0.000000e+00> : vector<8x128xf32>
    %96 = vector.multi_reduction <add>, %95, %cst_83 [0] : vector<1x8x128xf32> to vector<8x128xf32>
    %97 = arith.addf %94, %96 : vector<8x128xf32>
    %c0_84 = arith.constant 0 : index
    %c10_85 = arith.constant 10 : index
    %c0_86 = arith.constant 0 : index
    %c0_87 = arith.constant 0 : index
    %98 = vector.load %arg4[%c0_84, %c10_85, %c0_86, %c0_87] : memref<1x12x8x128xf32, #tpu.memory_space<vmem>>, vector<1x1x8x128xf32>
    %99 = vector.shape_cast %98 : vector<1x1x8x128xf32> to vector<8x128xf32>
    %100 = vector.shape_cast %97 : vector<8x128xf32> to vector<1x1x8x128xf32>
    tpu.vector_store %arg4[%c0_84, %c10_85, %c0_86, %c0_87], %100 {strides = array<i32>} : memref<1x12x8x128xf32, #tpu.memory_space<vmem>>, vector<1x1x8x128xf32>,
    %c0_88 = arith.constant 0 : index
    %c3 = arith.constant 3 : index
    %c0_89 = arith.constant 0 : index
    %c0_90 = arith.constant 0 : index
    %101 = vector.load %arg2[%c0_88, %c3, %c0_89, %c0_90] : memref<1x4x8x128xf32, #tpu.memory_space<vmem>>, vector<1x1x8x128xf32>
    %102 = vector.shape_cast %101 : vector<1x1x8x128xf32> to vector<8x128xf32>
    %c3_i32 = arith.constant 3 : i32
    %103 = vector.broadcast %c3_i32 : i32 to vector<8x128xi32>
    %104 = arith.cmpi eq, %4, %103 : vector<8x128xi32>
    %105 = arith.extui %104 : vector<8x128xi1> to vector<8x128xi32>
    %106 = arith.sitofp %105 : vector<8x128xi32> to vector<8x128xf32>
    %c0_91 = arith.constant 0 : index
    %c3_92 = arith.constant 3 : index
    %c0_93 = arith.constant 0 : index
    %c0_94 = arith.constant 0 : index
    %107 = vector.load %arg4[%c0_91, %c3_92, %c0_93, %c0_94] : memref<1x12x8x128xf32, #tpu.memory_space<vmem>>, vector<1x1x8x128xf32>
    %108 = vector.shape_cast %107 : vector<1x1x8x128xf32> to vector<8x128xf32>
    %109 = arith.mulf %102, %106 : vector<8x128xf32>
    %110 = vector.shape_cast %109 : vector<8x128xf32> to vector<1x8x128xf32>
    %cst_95 = arith.constant dense<0.000000e+00> : vector<8x128xf32>
    %111 = vector.multi_reduction <add>, %110, %cst_95 [0] : vector<1x8x128xf32> to vector<8x128xf32>
    %112 = arith.addf %108, %111 : vector<8x128xf32>
    %c0_96 = arith.constant 0 : index
    %c3_97 = arith.constant 3 : index
    %c0_98 = arith.constant 0 : index
    %c0_99 = arith.constant 0 : index
    %113 = vector.load %arg4[%c0_96, %c3_97, %c0_98, %c0_99] : memref<1x12x8x128xf32, #tpu.memory_space<vmem>>, vector<1x1x8x128xf32>
    %114 = vector.shape_cast %113 : vector<1x1x8x128xf32> to vector<8x128xf32>
    %115 = vector.shape_cast %112 : vector<8x128xf32> to vector<1x1x8x128xf32>
    tpu.vector_store %arg4[%c0_96, %c3_97, %c0_98, %c0_99], %115 {strides = array<i32>} : memref<1x12x8x128xf32, #tpu.memory_space<vmem>>, vector<1x1x8x128xf32>,
    %c0_100 = arith.constant 0 : index
    %c7 = arith.constant 7 : index
    %c0_101 = arith.constant 0 : index
    %c0_102 = arith.constant 0 : index
    %116 = vector.load %arg4[%c0_100, %c7, %c0_101, %c0_102] : memref<1x12x8x128xf32, #tpu.memory_space<vmem>>, vector<1x1x8x128xf32>
    %117 = vector.shape_cast %116 : vector<1x1x8x128xf32> to vector<8x128xf32>
    %118 = arith.mulf %102, %102 : vector<8x128xf32>
    %119 = vector.shape_cast %118 : vector<8x128xf32> to vector<1x8x128xf32>
    %cst_103 = arith.constant dense<0.000000e+00> : vector<8x128xf32>
    %120 = vector.multi_reduction <add>, %119, %cst_103 [0] : vector<1x8x128xf32> to vector<8x128xf32>
    %121 = arith.addf %117, %120 : vector<8x128xf32>
    %c0_104 = arith.constant 0 : index
    %c7_105 = arith.constant 7 : index
    %c0_106 = arith.constant 0 : index
    %c0_107 = arith.constant 0 : index
    %122 = vector.load %arg4[%c0_104, %c7_105, %c0_106, %c0_107] : memref<1x12x8x128xf32, #tpu.memory_space<vmem>>, vector<1x1x8x128xf32>
    %123 = vector.shape_cast %122 : vector<1x1x8x128xf32> to vector<8x128xf32>
    %124 = vector.shape_cast %121 : vector<8x128xf32> to vector<1x1x8x128xf32>
    tpu.vector_store %arg4[%c0_104, %c7_105, %c0_106, %c0_107], %124 {strides = array<i32>} : memref<1x12x8x128xf32, #tpu.memory_space<vmem>>, vector<1x1x8x128xf32>,
    %c0_108 = arith.constant 0 : index
    %c11 = arith.constant 11 : index
    %c0_109 = arith.constant 0 : index
    %c0_110 = arith.constant 0 : index
    %125 = vector.load %arg4[%c0_108, %c11, %c0_109, %c0_110] : memref<1x12x8x128xf32, #tpu.memory_space<vmem>>, vector<1x1x8x128xf32>
    %126 = vector.shape_cast %125 : vector<1x1x8x128xf32> to vector<8x128xf32>
    %127 = vector.shape_cast %106 : vector<8x128xf32> to vector<1x8x128xf32>
    %cst_111 = arith.constant dense<0.000000e+00> : vector<8x128xf32>
    %128 = vector.multi_reduction <add>, %127, %cst_111 [0] : vector<1x8x128xf32> to vector<8x128xf32>
    %129 = arith.addf %126, %128 : vector<8x128xf32>
    %c0_112 = arith.constant 0 : index
    %c11_113 = arith.constant 11 : index
    %c0_114 = arith.constant 0 : index
    %c0_115 = arith.constant 0 : index
    %130 = vector.load %arg4[%c0_112, %c11_113, %c0_114, %c0_115] : memref<1x12x8x128xf32, #tpu.memory_space<vmem>>, vector<1x1x8x128xf32>
    %131 = vector.shape_cast %130 : vector<1x1x8x128xf32> to vector<8x128xf32>
    %132 = vector.shape_cast %129 : vector<8x128xf32> to vector<1x1x8x128xf32>
    tpu.vector_store %arg4[%c0_112, %c11_113, %c0_114, %c0_115], %132 {strides = array<i32>} : memref<1x12x8x128xf32, #tpu.memory_space<vmem>>, vector<1x1x8x128xf32>,
    return
  }
  func.func @transform_0(%arg0: i32, %arg1: i32) -> (i32, i32, i32, i32) {
    %c0_i32 = arith.constant 0 : i32
    %c0_i32_0 = arith.constant 0 : i32
    %c0_i32_1 = arith.constant 0 : i32
    return %arg0, %c0_i32, %arg1, %c0_i32_0 : i32, i32, i32, i32
  }
  func.func @transform_1(%arg0: i32, %arg1: i32) -> (i32, i32, i32) {
    %c0_i32 = arith.constant 0 : i32
    %c0_i32_0 = arith.constant 0 : i32
    return %arg0, %arg1, %c0_i32 : i32, i32, i32
  }
  func.func @transform_2(%arg0: i32, %arg1: i32) -> (i32, i32, i32, i32) {
    %c0_i32 = arith.constant 0 : i32
    %c0_i32_0 = arith.constant 0 : i32
    %c0_i32_1 = arith.constant 0 : i32
    %c0_i32_2 = arith.constant 0 : i32
    return %arg0, %c0_i32, %c0_i32_0, %c0_i32_1 : i32, i32, i32, i32
  }
}

</mosaic_0001>

<bundles_post_ra>
// kernel: dice_loss.1
= control target key start
LH: loop header
LB: loop body
LE: loop exit
PB: predicated region body
PF: predicated region fallthrough
CT: control target
= control target key end

     0   :  { %s489_s9 = smov 0   ;;  %s491_s10 = smov 0   ;;  %s525_s0 = inlined_call_operand.vmem [shape: f32[2,4,8,128], index: 0, kind: input, shape index: {}]   ;;  %s526_s1 = inlined_call_operand.vmem [shape: s32[2,8,128], index: 1, kind: input, shape index: {}]   ;;  %s527_s2 = inlined_call_operand.vmem [shape: f32[2,12,8,128], index: 2, kind: output, shape index: {}]  }
   0x1   :  { %s493_s11 = smov 0  }
   0x2 LB: > { %s24_s12 = sadd.s32 1, %s467_s10  ;;  %p386_p0 = scmp.ge.s32.totalorder %s471_s11, 1  ;;  %s471_s11 = sphi %s493_s11, %s12_s11   ;;  %s467_s10 = sphi %s491_s10, %s529_s10   ;;  %s463_s9 = sphi %s489_s9, %s528_s9  }
   0x3   : > { %p26_p1 = scmp.ge.s32.totalorder %s24_s12, 2  ;;  %p143_p2 = scmp.lt.s32.totalorder %s471_s11, 3 }
   0x5   : > { %s531_s12 = smov (%p26_p1, %s24_s12), 0  ;;  %p144_p3 = pnand %p386_p0, %p143_p2 }
   0x6   : > { %p175_p4 = scmp.lt.s32.totalorder (!%p144_p3), %s463_s9, 1 }
   0x7   : > { %147 = sbr.rel (%p144_p3) target bundleno = 24 (0x18), region = 28 }
   0xc   : > { %s533_s9 = smov (!%p175_p4, %s463_s9), 1  ;;  %v473_v8 = vmov 0.0  }
   0xd   : > { %s423_s13 = smul.u32 96, %s533_s9  ;;  %s422_s14 = sshll.u32 %s533_s9, 5 }
   0xe   : > { %s182_s17 = scalar_lea.vmem %s525_s0, %s422_s14  ;;  %s389_s18 = sshll.u32 %s533_s9, 3 }
   0xf   : > { %s189_s21 = scalar_lea.vmem %s526_s1, %s389_s18  ;;  %v212_v0 = vld [vmem:[%s182_s17] sm:$0xff]  ;;  %v396_v1 = vld [vmem:[%s182_s17 + $0x8] sm:$0xff]  ;;  %v404_v2 = vld [vmem:[%s182_s17 + $0x10] sm:$0xff]  ;;  %s194_s24 = scalar_lea.vmem %s527_s2, %s423_s13 }
  0x10   : > { %v211_v3 = vld [vmem:[%s189_s21] sm:$0xff]  ;;  %v223_v4 = vmul.f32 %v212_v0, %v212_v0  ;;  %v245_v5 = vmul.f32 %v396_v1, %v396_v1  ;;  %v267_v6 = vmul.f32 %v404_v2, %v404_v2  ;;  %v412_v7 = vld [vmem:[%s182_s17 + $0x18] sm:$0xff] }
  0x11   : > { %vm213_vm0 = vcmp.eq.s32.totalorder %v211_v3, 0  ;;  %vm234_vm1 = vcmp.eq.s32.totalorder %v211_v3, 1  ;;  %vm256_vm2 = vcmp.eq.s32.totalorder %v211_v3, 2  ;;  %vm278_vm3 = vcmp.eq.s32.totalorder %v211_v3, 3 }
  0x12   : > { %v391_v9 = vsel %vm213_vm0, 1.0, %v473_v8  ;;  %v397_v10 = vsel %vm234_vm1, 1.0, %v473_v8  ;;  %393 = vst [vmem:[%s194_s24 + $0x20] sm:$0xff] %v223_v4  ;;  %401 = vst [vmem:[%s194_s24 + $0x28] sm:$0xff] %v245_v5  ;;  %v405_v13 = vsel %vm256_vm2, 1.0, %v473_v8  ;;  %v413_v14 = vsel %vm278_vm3, 1.0, %v473_v8 }
  0x13   : > { %v217_v11 = vmul.f32 %v391_v9, %v212_v0  ;;  %v239_v12 = vmul.f32 %v397_v10, %v396_v1  ;;  %v289_v15 = vmul.f32 %v412_v7, %v412_v7  ;;  %395 = vst [vmem:[%s194_s24 + $0x40] sm:$0xff] %v391_v9  ;;  %403 = vst [vmem:[%s194_s24 + $0x48] sm:$0xff] %v397_v10 }
  0x14   : > { %v261_v16 = vmul.f32 %v405_v13, %v404_v2  ;;  %409 = vst [vmem:[%s194_s24 + $0x30] sm:$0xff] %v267_v6  ;;  %v283_v17 = vmul.f32 %v413_v14, %v412_v7  ;;  %411 = vst [vmem:[%s194_s24 + $0x50] sm:$0xff] %v405_v13 }
  0x15   : > { %220 = vst [vmem:[%s194_s24] sm:$0xff] %v217_v11  ;;  %399 = vst [vmem:[%s194_s24 + $0x8] sm:$0xff] %v239_v12 }
  0x16   : > { %417 = vst [vmem:[%s194_s24 + $0x38] sm:$0xff] %v289_v15  ;;  %419 = vst [vmem:[%s194_s24 + $0x58] sm:$0xff] %v413_v14 }
  0x17   : > { %407 = vst [vmem:[%s194_s24 + $0x10] sm:$0xff] %v261_v16  ;;  %415 = vst [vmem:[%s194_s24 + $0x18] sm:$0xff] %v283_v17 }
  0x18 PF: > { %s12_s11 = sadd.s32 1, %s471_s11   ;;  %s528_s9 = smov %s467_s10 }
  0x19   : > { %p9_p5 = scmp.ge.s32.totalorder %s12_s11, 4   ;;  %s529_s10 = smov %s531_s12 }
  0x1b   :  { %11 = sbr.rel (!%p9_p5) target bundleno = 2 (0x2), region = 79 }

</bundles_post_ra>
